<compile_context>
chip_gen: v6e
topology: v6e:2x2x1
jax: 0.10.0
libtpu: 0.0.40
codegen_flags: <defaults>
</compile_context>

<pallas_src>
import functools

import jax
import jax.numpy as jnp
from jax import lax
from jax.experimental import pallas as pl
from jax.experimental.pallas import tpu as pltpu

NUM_TRAIN = 3


def _time_shifted(x, t_len, direction):
    """Shift x (rows=bt*T batch-major, D) by one time step with zero boundaries.

    direction=+1 -> returns x[t-1] (zero at t==0); direction=-1 -> x[t+1]
    (zero at t==T-1).  Uses an XLU sublane roll + VPU select; falls back to a
    zero-row concat when the sublane extent is not 8-aligned.
    """
    rows = x.shape[0]
    t_idx = lax.broadcasted_iota(jnp.int32, x.shape, 0) % t_len
    if rows % 8 == 0:
        shift = 1 if direction > 0 else rows - 1          # -1 mod rows
        shifted = pltpu.roll(x, shift, 0)                 # sublane rotation
    else:
        zrow = jnp.zeros((1, x.shape[1]), x.dtype)
        shifted = (jnp.concatenate([zrow, x[:-1]], axis=0) if direction > 0
                   else jnp.concatenate([x[1:], zrow], axis=0))
    # Mask also kills the rows that wrapped across batch boundaries inside the
    # tile (those positions are exactly t==0 / t==T-1).
    if direction > 0:
        return jnp.where(t_idx >= 1, shifted, 0.0)
    return jnp.where(t_idx <= t_len - 2, shifted, 0.0)


def _outhead_kernel(bt, t_len, c_out, num_layers, compute_dtype, *refs):
    """refs = (x, conv_w_im2col, w0, fused_b0_tiled, [w_i, b_i]*(L-1), out)."""
    x_ref, wc_ref, w0_ref, fb0_ref = refs[:4]
    extra = refs[4:4 + 2 * (num_layers - 1)]
    o_ref = refs[-1]

    # --- fused 3-tap Conv1d as one matmul -------------------------------
    x = x_ref[...]                                          # (bt*T, D) f32
    xp = _time_shifted(x, t_len, +1)                        # x[t-1]
    xn = _time_shifted(x, t_len, -1)                        # x[t+1]
    # single cast to the MXU operand dtype (no f32 round trip)
    xcat = jnp.concatenate([xp, x, xn], axis=-1).astype(compute_dtype)  # (bt*T, 3D)
    conv = jnp.dot(xcat, wc_ref[...],
                   preferred_element_type=jnp.float32)      # (bt*T, c_out) f32

    # --- batch-major rows -> time-major, lane-dense columns -------------
    # (bt*T, c_out) -> (T, bt*c_out).  Pure static sublane slices + one lane
    # concat: this is the inherent b: sublane->lane relayout; no MXU involved.
    conv_tm = jnp.concatenate(
        [conv[b * t_len:(b + 1) * t_len, :] for b in range(bt)],
        axis=-1).astype(compute_dtype)                      # (T, bt*c_out)

    # --- MLP layer 0: ONE matmul, N = bt*c_out ---------------------------
    # conv bias is already folded into fb0 (pre-tiled across bt) by the wrapper.
    h = jnp.dot(w0_ref[...], conv_tm,
                preferred_element_type=jnp.float32) + fb0_ref[...]   # (f1, bt*c_out)

    # --- remaining MLP layers (each one lane-dense matmul) ---------------
    for i in range(num_layers - 1):
        h = jnp.maximum(h, 0.0).astype(compute_dtype)       # ReLU between layers
        w = extra[2 * i][...]                               # (f_out, f_in)
        b = extra[2 * i + 1][...]                           # (f_out, 1) f32
        h = jnp.dot(w, h, preferred_element_type=jnp.float32) + b

    o_ref[...] = h.astype(o_ref.dtype)                      # (out_ch, bt*c_out)


def init_params(key, in_dim, in_channels, out_dim, out_channels, num_layers):
    """PyTorch-layout parameters: Conv1d (c_out, in, k), Linear (out, in)."""
    c_out = out_dim * NUM_TRAIN
    keys = jax.random.split(key, 2 + 2 * num_layers)
    params = {
        "conv_w": 0.1 * jax.random.normal(keys[0], (c_out, in_dim, 3), jnp.float32),
        "conv_b": 0.1 * jax.random.normal(keys[1], (c_out,), jnp.float32),
    }
    dims = [in_channels] + [2 * in_channels] * (num_layers - 1) + [out_channels]
    lin = []
    for i in range(num_layers):
        w = 0.1 * jax.random.normal(keys[2 + 2 * i], (dims[i + 1], dims[i]), jnp.float32)
        b = 0.1 * jax.random.normal(keys[3 + 2 * i], (dims[i + 1],), jnp.float32)
        lin.append((w, b))
    params["linear"] = lin
    return params


def _pick_batch_tile(B, T, D, c_out, f1, out_channels, batch_tile):
    if batch_tile is not None:
        return max(1, min(batch_tile, B))
    # Default: one large tile (best on single-TC v5e/v6e: amortizes the
    # ~0.35us/step overhead and maximizes bt*c_out lane density).  On v7x pass
    # batch_tile=ceil(B/2) so the 'parallel' axis shards across both TCs.
    # Cap so the per-tile f32 working set stays well under the VMEM budget and
    # the per-b slice unroll stays bounded.
    per_b = 4 * (2 * T * D + 3 * T * D + 2 * T * c_out
                 + 3 * f1 * c_out + 2 * out_channels * c_out)
    budget = 20 * 1024 * 1024
    return max(1, min(B, 128, budget // max(per_b, 1)))


def outhead_tbc_forward(x, params, out_dim, out_channels, num_layers,
                        *, batch_tile=None, compute_dtype=jnp.float32):
    B, T, D = x.shape
    c_out = out_dim * NUM_TRAIN
    cd = compute_dtype

    lin = params["linear"]
    w0, b0 = lin[0]                        # (f1, T), (f1,)
    f1 = w0.shape[0]

    bt = _pick_batch_tile(B, T, D, c_out, f1, out_channels, batch_tile)
    n_tiles = pl.cdiv(B, bt)
    b_pad = n_tiles * bt
    if b_pad != B:                         # zero-pad the batch to a whole tile
        x = jnp.pad(x, ((0, b_pad - B), (0, 0), (0, 0)))

    # x stays f32 in HBM; the (free, contiguous) reshape lets each grid step
    # DMA one contiguous (bt*T, D) slab whose rows feed the conv matmul's M dim.
    x2 = x.astype(jnp.float32).reshape(b_pad * T, D)

    # Conv weight (c_out, D, 3) -> one (3*D, c_out) im2col matrix with rows
    # ordered (k, d) to match jnp.concatenate([x_{t-1}, x_t, x_{t+1}], -1).
    wc = jnp.transpose(params["conv_w"], (2, 1, 0)).reshape(3 * D, c_out).astype(cd)

    # Fold the conv bias into the first Linear's bias and pre-tile across bt:
    #   W0 @ (conv + b_c 1^T) + b0 == W0 @ conv + (b0[:,None] + rowsum(W0)[:,None]*b_c[None,:])
    fused_b0 = (b0[:, None]
                + jnp.sum(w0, axis=1)[:, None] * params["conv_b"][None, :])
    fb0_tiled = jnp.tile(fused_b0, (1, bt)).astype(jnp.float32)        # (f1, bt*c_out)

    extra = []
    for w, b_ in lin[1:]:
        extra.append(w.astype(cd))                                     # (f_out, f_in)
        extra.append(b_[:, None].astype(jnp.float32))                  # (f_out, 1)

    kernel = functools.partial(_outhead_kernel, bt, T, c_out, num_layers, cd)

    in_specs = [
        pl.BlockSpec((bt * T, D), lambda i: (i, 0)),
        pl.BlockSpec(wc.shape, lambda i: (0, 0)),
        pl.BlockSpec(w0.shape, lambda i: (0, 0)),
        pl.BlockSpec(fb0_tiled.shape, lambda i: (0, 0)),
    ]
    for arr in extra:
        in_specs.append(pl.BlockSpec(arr.shape, lambda i: (0, 0)))

    # Advisory cost estimate for the XLA scheduler.
    flops = 2 * b_pad * T * (3 * D) * c_out + 2 * b_pad * c_out * f1 * T
    dims = [f1] + [w.shape[0] for w, _ in lin[1:]]
    for i in range(1, len(dims)):
        flops += 2 * b_pad * c_out * dims[i] * dims[i - 1]
    bytes_accessed = int(
        x2.size * 4 + wc.size * wc.dtype.itemsize + w0.size * w0.dtype.itemsize
        + fb0_tiled.size * 4
        + sum(a.size * a.dtype.itemsize for a in extra)
        + n_tiles * out_channels * bt * c_out * 4)

    y = pl.pallas_call(
        kernel,
        out_shape=jax.ShapeDtypeStruct((n_tiles, out_channels, bt * c_out),
                                       jnp.float32),
        grid=(n_tiles,),
        in_specs=in_specs,
        # leading grid dim squeezed -> the kernel writes o_ref[...] directly.
        out_specs=pl.BlockSpec((None, out_channels, bt * c_out), lambda i: (i, 0, 0)),
        compiler_params=pltpu.CompilerParams(
            dimension_semantics=("parallel",),
            vmem_limit_bytes=64 * 1024 * 1024),
        cost_estimate=pl.CostEstimate(flops=flops, transcendentals=0,
                                      bytes_accessed=bytes_accessed),
    )(x2, wc, w0.astype(cd), fb0_tiled, *extra)

    # Glue: (n_tiles, out_ch, bt*c_out) with lane order (b, 3, out_dim) ->
    # matches .contiguous().view(B, 3, out_dim, -1).transpose(2, 3).
    y = y.reshape(n_tiles, out_channels, bt, NUM_TRAIN, out_dim)
    y = jnp.transpose(y, (0, 2, 3, 1, 4)).reshape(b_pad, NUM_TRAIN, out_channels, out_dim)
    return y[:B]


def reference(x, params, out_dim, out_channels, num_layers):
    """Pure-JAX reference of the same forward pass (for correctness checks)."""
    B, T, D = x.shape
    hp = jax.lax.Precision.HIGHEST
    xp = jnp.pad(x, ((0, 0), (1, 1), (0, 0)))                          # pad time
    wc = params["conv_w"]                                              # (c_out, D, 3)
    y = sum(jnp.einsum("btd,cd->bct", xp[:, k:k + T, :], wc[:, :, k], precision=hp)
            for k in range(3))
    y = y + params["conv_b"][None, :, None]                            # (B, c_out, T)
    h = y
    for i, (w, b) in enumerate(params["linear"]):
        h = jnp.einsum("bct,ut->bcu", h, w, precision=hp) + b[None, None, :]
        if i < num_layers - 1:
            h = jnp.maximum(h, 0.0)
    return jnp.transpose(h.reshape(B, NUM_TRAIN, out_dim, out_channels), (0, 1, 3, 2))


if __name__ == "__main__":
    # x: (B, T, D) with T == in_channels (BasicExpert fan-in), D == in_dim.
    B, T, D = 2, 16, 8
    in_dim, in_channels = D, T
    out_dim, out_channels, num_layers = 4, 8, 2

    key = jax.random.PRNGKey(0)
    kx, kp, kx2 = jax.random.split(key, 3)
    x = jax.random.normal(kx, (B, T, D), jnp.float32)
    params = init_params(kp, in_dim, in_channels, out_dim, out_channels, num_layers)

    ref = reference(x, params, out_dim, out_channels, num_layers)

    # 1) f32 compute path — tight correctness check.
    out = outhead_tbc_forward(x, params, out_dim, out_channels, num_layers,
                              compute_dtype=jnp.float32)
    out = jax.block_until_ready(out)
    assert out.shape == (B, NUM_TRAIN, out_channels, out_dim), out.shape
    assert jnp.allclose(out, ref, atol=1e-4, rtol=1e-4), \
        float(jnp.max(jnp.abs(out - ref)))

    # 2) bf16 operands (halved weight DMA bytes, 2x MXU rate), f32 accumulation.
    out_bf = outhead_tbc_forward(x, params, out_dim, out_channels, num_layers,
                                 compute_dtype=jnp.bfloat16)
    out_bf = jax.block_until_ready(out_bf)
    assert jnp.allclose(out_bf, ref, atol=5e-2, rtol=5e-2)

    # 3) batch-tiled grid (B not a multiple of the tile -> zero-padded tail).
    B2 = 5
    x2 = jax.random.normal(kx2, (B2, T, D), jnp.float32)
    ref2 = reference(x2, params, out_dim, out_channels, num_layers)
    out2 = outhead_tbc_forward(x2, params, out_dim, out_channels, num_layers,
                               batch_tile=2, compute_dtype=jnp.float32)
    out2 = jax.block_until_ready(out2)
    assert out2.shape == (B2, NUM_TRAIN, out_channels, out_dim)
    assert jnp.allclose(out2, ref2, atol=1e-4, rtol=1e-4)

    print("KERNEL_OK")
</pallas_src>

<mosaic_0001>
module attributes {stable_mosaic.version = 11 : i64} {
  func.func @_outhead_kernel(%arg0: i32, %arg1: memref<32x8xf32, #tpu.memory_space<vmem>>, %arg2: memref<24x12xf32, #tpu.memory_space<vmem>>, %arg3: memref<32x16xf32, #tpu.memory_space<vmem>>, %arg4: memref<32x24xf32, #tpu.memory_space<vmem>>, %arg5: memref<8x32xf32, #tpu.memory_space<vmem>>, %arg6: memref<8x1xf32, #tpu.memory_space<vmem>>, %arg7: memref<1x8x24xf32, #tpu.memory_space<vmem>>) attributes {dimension_semantics = [#tpu.dimension_semantics<parallel>], iteration_bounds = array<i64: 1>, scalar_prefetch = 0 : i64, scratch_operands = 0 : i64, tpu.core_type = #tpu.core_type<tc>, window_params = [{transform_indices = @transform_0, window_bounds = array<i64: 32, 8>}, {pipeline_mode = #tpu.pipeline_mode<synchronous>, transform_indices = @transform_1, window_bounds = array<i64: 24, 12>}, {pipeline_mode = #tpu.pipeline_mode<synchronous>, transform_indices = @transform_2, window_bounds = array<i64: 32, 16>}, {pipeline_mode = #tpu.pipeline_mode<synchronous>, transform_indices = @transform_3, window_bounds = array<i64: 32, 24>}, {pipeline_mode = #tpu.pipeline_mode<synchronous>, transform_indices = @transform_4, window_bounds = array<i64: 8, 32>}, {pipeline_mode = #tpu.pipeline_mode<synchronous>, transform_indices = @transform_5, window_bounds = array<i64: 8, 1>}, {transform_indices = @transform_6, window_bounds = array<i64: 1, 8, 24>}]} {
    %c0 = arith.constant 0 : index
    %c0_0 = arith.constant 0 : index
    %0 = vector.load %arg1[%c0, %c0_0] : memref<32x8xf32, #tpu.memory_space<vmem>>, vector<32x8xf32>
    %1 = tpu.iota {dimensions = array<i32: 0>} : vector<32x8xi32>
    %c16_i32 = arith.constant 16 : i32
    %c0_i32 = arith.constant 0 : i32
    %2 = arith.cmpi eq, %c16_i32, %c0_i32 : i32
    %c1_i32 = arith.constant 1 : i32
    %3 = arith.select %2, %c1_i32, %c16_i32 : i32
    %4 = vector.broadcast %3 : i32 to vector<32x8xi32>
    %5 = arith.remsi %1, %4 : vector<32x8xi32>
    %c0_i32_1 = arith.constant 0 : i32
    %6 = vector.broadcast %c0_i32_1 : i32 to vector<32x8xi32>
    %7 = arith.cmpi ne, %5, %6 : vector<32x8xi32>
    %c0_i32_2 = arith.constant 0 : i32
    %8 = vector.broadcast %c0_i32_2 : i32 to vector<32x8xi32>
    %9 = arith.cmpi slt, %5, %8 : vector<32x8xi32>
    %c0_i32_3 = arith.constant 0 : i32
    %10 = arith.cmpi slt, %3, %c0_i32_3 : i32
    %11 = vector.broadcast %10 : i1 to vector<32x8xi1>
    %12 = vector.broadcast %11 : vector<32x8xi1> to vector<32x8xi1>
    %13 = arith.xori %9, %12 : vector<32x8xi1>
    %14 = arith.andi %13, %7 : vector<32x8xi1>
    %15 = vector.broadcast %3 : i32 to vector<32x8xi32>
    %16 = arith.addi %5, %15 : vector<32x8xi32>
    %17 = arith.select %14, %16, %5 : vector<32x8xi1>, vector<32x8xi32>
    %c1_i32_4 = arith.constant 1 : i32
    %18 = tpu.dynamic_rotate %0 by %c1_i32_4 dim 0 : vector<32x8xf32>, i32 -> vector<32x8xf32>
    %c1_i32_5 = arith.constant 1 : i32
    %19 = vector.broadcast %c1_i32_5 : i32 to vector<32x8xi32>
    %20 = arith.cmpi sge, %17, %19 : vector<32x8xi32>
    %cst = arith.constant 0.000000e+00 : f32
    %21 = vector.broadcast %cst : f32 to vector<32x8xf32>
    %22 = arith.select %20, %18, %21 : vector<32x8xi1>, vector<32x8xf32>
    %23 = tpu.iota {dimensions = array<i32: 0>} : vector<32x8xi32>
    %c16_i32_6 = arith.constant 16 : i32
    %c0_i32_7 = arith.constant 0 : i32
    %24 = arith.cmpi eq, %c16_i32_6, %c0_i32_7 : i32
    %c1_i32_8 = arith.constant 1 : i32
    %25 = arith.select %24, %c1_i32_8, %c16_i32_6 : i32
    %26 = vector.broadcast %25 : i32 to vector<32x8xi32>
    %27 = arith.remsi %23, %26 : vector<32x8xi32>
    %c0_i32_9 = arith.constant 0 : i32
    %28 = vector.broadcast %c0_i32_9 : i32 to vector<32x8xi32>
    %29 = arith.cmpi ne, %27, %28 : vector<32x8xi32>
    %c0_i32_10 = arith.constant 0 : i32
    %30 = vector.broadcast %c0_i32_10 : i32 to vector<32x8xi32>
    %31 = arith.cmpi slt, %27, %30 : vector<32x8xi32>
    %c0_i32_11 = arith.constant 0 : i32
    %32 = arith.cmpi slt, %25, %c0_i32_11 : i32
    %33 = vector.broadcast %32 : i1 to vector<32x8xi1>
    %34 = vector.broadcast %33 : vector<32x8xi1> to vector<32x8xi1>
    %35 = arith.xori %31, %34 : vector<32x8xi1>
    %36 = arith.andi %35, %29 : vector<32x8xi1>
    %37 = vector.broadcast %25 : i32 to vector<32x8xi32>
    %38 = arith.addi %27, %37 : vector<32x8xi32>
    %39 = arith.select %36, %38, %27 : vector<32x8xi1>, vector<32x8xi32>
    %c31_i32 = arith.constant 31 : i32
    %40 = tpu.dynamic_rotate %0 by %c31_i32 dim 0 : vector<32x8xf32>, i32 -> vector<32x8xf32>
    %c14_i32 = arith.constant 14 : i32
    %41 = vector.broadcast %c14_i32 : i32 to vector<32x8xi32>
    %42 = arith.cmpi sle, %39, %41 : vector<32x8xi32>
    %cst_12 = arith.constant 0.000000e+00 : f32
    %43 = vector.broadcast %cst_12 : f32 to vector<32x8xf32>
    %44 = arith.select %42, %40, %43 : vector<32x8xi1>, vector<32x8xf32>
    %45 = tpu.concatenate %22, %0, %44 in 1 : vector<32x8xf32>, vector<32x8xf32>, vector<32x8xf32> -> vector<32x24xf32>
    %c0_13 = arith.constant 0 : index
    %c0_14 = arith.constant 0 : index
    %46 = vector.load %arg2[%c0_13, %c0_14] : memref<24x12xf32, #tpu.memory_space<vmem>>, vector<24x12xf32>
    %cst_15 = arith.constant dense<0.000000e+00> : vector<32x12xf32>
    %47 = tpu.matmul %45, %46, %cst_15 {dimension_numbers = #tpu.dot_dimension_numbers<[1], [0], [0], [1], [0, 0, 1, 1], [], []>} : vector<32x24xf32>, vector<24x12xf32>, vector<32x12xf32> -> vector<32x12xf32>
    %48 = vector.extract_strided_slice %47 {offsets = [0, 0], sizes = [16, 12], strides = [1, 1]} : vector<32x12xf32> to vector<16x12xf32>
    %49 = vector.extract_strided_slice %47 {offsets = [16, 0], sizes = [16, 12], strides = [1, 1]} : vector<32x12xf32> to vector<16x12xf32>
    %50 = tpu.concatenate %48, %49 in 1 : vector<16x12xf32>, vector<16x12xf32> -> vector<16x24xf32>
    %c0_16 = arith.constant 0 : index
    %c0_17 = arith.constant 0 : index
    %51 = vector.load %arg3[%c0_16, %c0_17] : memref<32x16xf32, #tpu.memory_space<vmem>>, vector<32x16xf32>
    %cst_18 = arith.constant dense<0.000000e+00> : vector<32x24xf32>
    %52 = tpu.matmul %51, %50, %cst_18 {dimension_numbers = #tpu.dot_dimension_numbers<[1], [0], [0], [1], [0, 0, 1, 1], [], []>} : vector<32x16xf32>, vector<16x24xf32>, vector<32x24xf32> -> vector<32x24xf32>
    %c0_19 = arith.constant 0 : index
    %c0_20 = arith.constant 0 : index
    %53 = vector.load %arg4[%c0_19, %c0_20] : memref<32x24xf32, #tpu.memory_space<vmem>>, vector<32x24xf32>
    %54 = arith.addf %52, %53 : vector<32x24xf32>
    %cst_21 = arith.constant 0.000000e+00 : f32
    %55 = vector.broadcast %cst_21 : f32 to vector<32x24xf32>
    %56 = arith.maximumf %54, %55 : vector<32x24xf32>
    %c0_22 = arith.constant 0 : index
    %c0_23 = arith.constant 0 : index
    %57 = vector.load %arg5[%c0_22, %c0_23] : memref<8x32xf32, #tpu.memory_space<vmem>>, vector<8x32xf32>
    %c0_24 = arith.constant 0 : index
    %c0_25 = arith.constant 0 : index
    %58 = vector.load %arg6[%c0_24, %c0_25] : memref<8x1xf32, #tpu.memory_space<vmem>>, vector<8x1xf32>
    %cst_26 = arith.constant dense<0.000000e+00> : vector<8x24xf32>
    %59 = tpu.matmul %57, %56, %cst_26 {dimension_numbers = #tpu.dot_dimension_numbers<[1], [0], [0], [1], [0, 0, 1, 1], [], []>} : vector<8x32xf32>, vector<32x24xf32>, vector<8x24xf32> -> vector<8x24xf32>
    %60 = vector.broadcast %58 : vector<8x1xf32> to vector<8x24xf32>
    %61 = arith.addf %59, %60 : vector<8x24xf32>
    %c0_27 = arith.constant 0 : index
    %c0_28 = arith.constant 0 : index
    %c0_29 = arith.constant 0 : index
    %62 = vector.load %arg7[%c0_27, %c0_28, %c0_29] : memref<1x8x24xf32, #tpu.memory_space<vmem>>, vector<1x8x24xf32>
    %63 = vector.shape_cast %62 : vector<1x8x24xf32> to vector<8x24xf32>
    %64 = vector.shape_cast %61 : vector<8x24xf32> to vector<1x8x24xf32>
    tpu.vector_store %arg7[%c0_27, %c0_28, %c0_29], %64 {strides = array<i32>} : memref<1x8x24xf32, #tpu.memory_space<vmem>>, vector<1x8x24xf32>,
    return
  }
  func.func @transform_0(%arg0: i32) -> (i32, i32) {
    %c0_i32 = arith.constant 0 : i32
    %c0_i32_0 = arith.constant 0 : i32
    return %arg0, %c0_i32 : i32, i32
  }
  func.func @transform_1(%arg0: i32) -> (i32, i32) {
    %c0_i32 = arith.constant 0 : i32
    %c0_i32_0 = arith.constant 0 : i32
    %c0_i32_1 = arith.constant 0 : i32
    return %c0_i32, %c0_i32_0 : i32, i32
  }
  func.func @transform_2(%arg0: i32) -> (i32, i32) {
    %c0_i32 = arith.constant 0 : i32
    %c0_i32_0 = arith.constant 0 : i32
    %c0_i32_1 = arith.constant 0 : i32
    return %c0_i32, %c0_i32_0 : i32, i32
  }
  func.func @transform_3(%arg0: i32) -> (i32, i32) {
    %c0_i32 = arith.constant 0 : i32
    %c0_i32_0 = arith.constant 0 : i32
    %c0_i32_1 = arith.constant 0 : i32
    return %c0_i32, %c0_i32_0 : i32, i32
  }
  func.func @transform_4(%arg0: i32) -> (i32, i32) {
    %c0_i32 = arith.constant 0 : i32
    %c0_i32_0 = arith.constant 0 : i32
    %c0_i32_1 = arith.constant 0 : i32
    return %c0_i32, %c0_i32_0 : i32, i32
  }
  func.func @transform_5(%arg0: i32) -> (i32, i32) {
    %c0_i32 = arith.constant 0 : i32
    %c0_i32_0 = arith.constant 0 : i32
    %c0_i32_1 = arith.constant 0 : i32
    return %c0_i32, %c0_i32_0 : i32, i32
  }
  func.func @transform_6(%arg0: i32) -> (i32, i32, i32) {
    %c0_i32 = arith.constant 0 : i32
    %c0_i32_0 = arith.constant 0 : i32
    %c0_i32_1 = arith.constant 0 : i32
    return %arg0, %c0_i32, %c0_i32_0 : i32, i32, i32
  }
}

</mosaic_0001>

<bundles_post_ra>
// kernel: tpu_custom_call.1
= control target key start
LH: loop header
LB: loop body
LE: loop exit
PB: predicated region body
PF: predicated region fallthrough
CT: control target
= control target key end

     0   :  { %v28_v3 = vlaneseq  ;;  %s564_s27 = smov 8   ;;  %s693_s0 = inlined_call_operand.vmem [shape: f32[32,8], index: 0, kind: input, shape index: {}]   ;;  %s694_s1 = inlined_call_operand.vmem [shape: f32[24,12], index: 1, kind: input, shape index: {}]   ;;  %s695_s2 = inlined_call_operand.vmem [shape: f32[32,16], index: 2, kind: input, shape index: {}]   ;;  %s696_s3 = inlined_call_operand.vmem [shape: f32[32,24], index: 3, kind: input, shape index: {}]   ;;  %s697_s4 = inlined_call_operand.vmem [shape: f32[8,32], index: 4, kind: input, shape index: {}]   ;;  %s698_s5 = inlined_call_operand.vmem [shape: f32[8,1], index: 5, kind: input, shape index: {}]   ;;  %s699_s6 = inlined_call_operand.hbm [shape: f32[1,8,24], index: 6, kind: output, shape index: {}]  }
   0x1   :  { %v24_v0 = vld [vmem:[%s693_s0] sm:$0xff]  ;;  %v27_v1 = vld [vmem:[%s693_s0 + $0x18] sm:$0xff]  ;;  %v25_v2 = vld [vmem:[%s693_s0 + $0x8] sm:$0xff] }
   0x2   :  { %119 = vrot.lane.b32.xlu0 %v24_v0, %s564_s27  ;;  %v98_v4 = vrot.slane %v24_v0, 1  ;;  %125 = vrot.lane.b32.xlu1 %v27_v1, %s564_s27  ;;  %v101_v5 = vrot.slane %v27_v1, 1  ;;  %v26_v6 = vld [vmem:[%s693_s0 + $0x10] sm:$0xff]  ;;  %v81_v8 = vrot.slane %v24_v0, 7  ;;  %v99_v9 = vrot.slane %v25_v2, 1  ;;  %v158_v11 = vld [vmem:[%s694_s1 + $0x8] sm:$0xff] }
   0x3   :  { %v159_v7 = vld [vmem:[%s694_s1 + $0x10] sm:$0xff]  ;;  %v29_v10 = vshrl.u32 %v28_v3, 7  ;;  %v84_v12 = vrot.slane %v27_v1, 7  ;;  %v82_v13 = vrot.slane %v25_v2, 7  ;;  %v83_v14 = vrot.slane %v26_v6, 7 }
   0x4   :  { %501 = vmatprep.subr.mxu0 %v159_v7  ;;  %v100_v15 = vrot.slane %v26_v6, 1 }
   0x5   :  { %502 = vmatpush3.msra.mxu0 %v159_v7 }
   0x6   :  { %11 = vsyncpa [#allocation3], 0  ;;  %vm102_vm0 = vcmp.lt.s32.totalorder %v29_v10, 7  ;;  %v30_v16 = vadd.s32 8, %v29_v10  ;;  %v32_v17 = vadd.s32 24, %v29_v10  ;;  %v37_v18 = vand.u32 15, %v29_v10  ;;  %503 = vmatprep.subr.mxu0 %v158_v11  ;;  %121 = vrot.lane.b32.xlu0 %v25_v2, %s564_s27 }
   0x7   :  { %v157_v19 = vld [vmem:[%s694_s1] sm:$0xff]  ;;  %v105_v20 = vsel %vm102_vm0, %v98_v4, %v99_v9  ;;  %v104_v21 = vsel %vm102_vm0, %v99_v9, %v100_v15  ;;  %v106_v22 = vsel %vm102_vm0, %v101_v5, %v98_v4  ;;  %s565_s11 = smov 16   ;;  %vm85_vm1 = vcmp.lt.s32.totalorder %v29_v10, 1  ;;  %504 = vmatpush3.msra.mxu0 %v158_v11  ;;  %s566_s13 = smov 12   ;;  %v270_v63 = vld [vmem:[%s695_s2 + $0x8] sm:$0xff]  ;;  %v271_v0 = vld [vmem:[%s695_s2 + $0x10] sm:$0xff] }
   0x8   :  { %135 = vrot.lane.b32.xlu1 %v105_v20, %s565_s11  ;;  %v44_v23 = vand.u32 15, %v30_v16  ;;  %v58_v24 = vand.u32 15, %v32_v17  ;;  %vm633_vm2 = vcmp.ge.s32.totalorder %v37_v18, 1  ;;  %v89_v26 = vsel %vm85_vm1, %v84_v12, %v81_v8  ;;  %505 = vmatprep.subr.mxu0 %v157_v19  ;;  %v269_v54 = vld [vmem:[%s695_s2] sm:$0xff]  ;;  %v272_v1 = vld [vmem:[%s695_s2 + $0x18] sm:$0xff] }
   0x9   :  { %v86_v27 = vsel %vm85_vm1, %v83_v14, %v84_v12  ;;  %v88_v28 = vsel %vm85_vm1, %v81_v8, %v82_v13  ;;  %v31_v29 = vadd.s32 16, %v29_v10  ;;  %v94_v30 = vsel %vm633_vm2, %v89_v26, 0.0  ;;  %506 = vmatpush3.msra.mxu0 %v157_v19  ;;  %v379_v3 = vld [vmem:[%s698_s5] sm:$0xff]  ;;  %v276_v7 = vld [vmem:[%s696_s3 + $0x18] sm:$0xff]  ;;  %v274_v8 = vld [vmem:[%s696_s3 + $0x8] sm:$0xff] }
   0xa   :  { %vm108_vm3 = vcmp.le.s32.totalorder %v44_v23, 14  ;;  %vm110_vm4 = vcmp.le.s32.totalorder %v58_v24, 14  ;;  %v87_v31 = vsel %vm85_vm1, %v82_v13, %v83_v14  ;;  %123 = vrot.lane.b32.xlu0 %v26_v6, %s564_s27  ;;  %v103_v34 = vsel %vm102_vm0, %v100_v15, %v101_v5  ;;  %v275_v10 = vld [vmem:[%s696_s3 + $0x10] sm:$0xff]  ;;  %v273_v12 = vld [vmem:[%s696_s3] sm:$0xff]  ;;  %s570_s3 = smov [#allocation2]  }
   0xb   :  { %v112_v32 = vsel %vm108_vm3, %v104_v21, 0.0  ;;  %v51_v33 = vand.u32 15, %v31_v29  ;;  %v114_v35 = vsel %vm110_vm4, %v106_v22, 0.0  ;;  %vm147_vm6 = vcmask 64512   ;;  %v378_v21 = vld [vmem:[%s697_s4] sm:$0xff]  ;;  %s466_s30 = sshll.u32 %s570_s3, 4  ;;  %s467_s30 = int_to_ptr.vmem [resolvable:$true] %s466_s30 }
   0xc   :  { %137 = vrot.lane.b32.xlu1 %v112_v32, %s565_s11  ;;  %vm152_vm7 = vcmask 130048   ;;  %vm160_vm8 = vcmask 195584   ;;  %vm266_vm9 = vcmask 97280   ;;  %v567_v2 = vmov 0.0   ;;  %s542_s7 = scalar_lea.vmem %s467_s30, 128  ;;  %p547_p1 = scmp.lt.s32.totalorder %s467_s30, %s467_s30 }
   0xd   :  { %vm641_vm5 = vcmp.ge.s32.totalorder %v51_v33, 1  ;;  %517 = vmatprep.mubr.msk.f32.mxu1 %vm152_vm7, %v269_v54  ;;  %vm568_vm10 = vmmov 0   ;;  %v569_v4 = vmov 0   ;;  %vm385_vm11 = vcmask 261120   ;;  %p543_p0 = scmp.ne.s32.totalorder %s467_s30, %s542_s7  ;;  %p548_p2 = scmp.lt.s32.totalorder %s542_s7, %s542_s7 }
   0xe   :  { %v96_v37 = vsel %vm641_vm5, %v87_v31, 0.0  ;;  %139 = vrot.lane.b32.xlu0 %v103_v34, %s565_s11 }
   0xf   :  { %541 = vset.pattern.permute.xlu0 %v569_v4  ;;  %p549_p3 = por %p548_p2, %p547_p1 }
  0x10   :  { %141 = vrot.lane.b32.xlu1 %v114_v35, %s565_s11 }
  0x11   :  { %p550_p4 = pnand %p549_p3, %p543_p0 }
  0x74   :  { %v120_v38 = vpop.permute.xlu0 %119  ;;  %v126_v39 = vpop.permute.xlu1 %125 }
  0x75   :  { %v148_v41 = vsel %vm147_vm6, %v94_v30, %v120_v38  ;;  %v151_v50 = vsel %vm147_vm6, %v86_v27, %v126_v39 }
  0x78   :  { %v122_v40 = vpop.permute.xlu0 %121 }
  0x79   :  { %v149_v45 = vsel %vm147_vm6, %v88_v28, %v122_v40 }
  0x7a   :  { %v136_v42 = vpop.permute.xlu1 %135 }
  0x7b   :  { %v153_v43 = vsel %vm152_vm7, %v148_v41, %v136_v42 }
  0x7c   :  { %507 = vmatprep.mubr.msk.f32.mxu0 %vm160_vm8, %v153_v43  ;;  %v124_v44 = vpop.permute.xlu0 %123 }
  0x7d   :  { %v150_v48 = vsel %vm147_vm6, %v96_v37, %v124_v44 }
  0x7e   :  { %v138_v46 = vpop.permute.xlu1 %137 }
  0x7f   :  { %v154_v47 = vsel %vm152_vm7, %v149_v45, %v138_v46 }
  0x80   :  { %508 = vmatmul.mubr.msk.f32.vlgmr.msra.gmra.mxu0 %vm160_vm8, %v154_v47  ;;  %v140_v49 = vpop.permute.xlu0 %139 }
  0x81   :  { %v155_v51 = vsel %vm152_vm7, %v150_v48, %v140_v49 }
  0x82   :  { %v142_v52 = vpop.permute.xlu1 %141  ;;  %510 = vmatprep.mubr.msk.f32.mxu0 %vm160_vm8, %v155_v51 }
  0x83   :  { %v156_v53 = vsel %vm152_vm7, %v151_v50, %v142_v52 }
  0x84   :  { %511 = vmatmul.mubr.msk.f32.gmra.mxu0 %vm160_vm8, %v156_v53 }
 0x140   :  { %v509_v55 = vpop.f32.mrf.mxu0 }
 0x142   :  { %v239_v56 = vpop.f32.mrf.mxu0 }
 0x144   :  { %v512_v57 = vpop.f32.mrf.mxu0 }
 0x145   :  { %262 = vrot.lane.b32.xlu0 %v512_v57, %s566_s13 }
 0x146   :  { %v249_v58 = vpop.f32.mrf.mxu0 }
 0x147   :  { %260 = vrot.lane.b32.xlu1 %v249_v58, %s566_s13 }
 0x149   :  { %382 = vperm.xlu0 %541, %v379_v3  }
 0x1b7   :  { %v263_v59 = vpop.permute.xlu0 %262 }
 0x1b8   :  { %v268_v60 = vsel %vm266_vm9, %v509_v55, %v263_v59 }
 0x1b9   :  { %513 = vmatprep.subr.mxu1 %v268_v60  ;;  %v261_v61 = vpop.permute.xlu1 %260 }
 0x1ba   :  { %514 = vmatpush3.msra.mxu1 %v268_v60  ;;  %v267_v62 = vsel %vm266_vm9, %v239_v56, %v261_v61 }
 0x1bb   :  { %515 = vmatprep.subr.mxu1 %v267_v62 }
 0x1bc   :  { %516 = vmatpush3.msra.mxu1 %v267_v62 }
 0x1bd   :  { %518 = vmatmul.mubr.msk.f32.vlgmr.msra.gmra.mxu1 %vm152_vm7, %v270_v63  ;;  %523 = vmatprep.subr.mxu1 %v567_v2 }
 0x1be   :  { %520 = vmatprep.mubr.msk.f32.mxu1 %vm152_vm7, %v271_v0 }
 0x1c1   :  { %521 = vmatmul.mubr.msk.f32.gmra.mxu1 %vm152_vm7, %v272_v1 }
 0x1c2   :  { %531 = vmatprep.mubr.msk.f32.mxu1 %vm568_vm10, %v567_v2 }
 0x1c4   :  { %v383_v22 = vpop.permute.xlu0 %382 }
 0x27d   :  { %v519_v5 = vpop.f32.mrf.mxu1 }
 0x27e   :  { %v361_v14 = vadd.f32 %v519_v5, %v274_v8 }
 0x27f   :  { %v355_v6 = vpop.f32.mrf.mxu1 }
 0x280   :  { %v356_v17 = vadd.f32 %v355_v6, %v273_v12  ;;  %v375_v19 = vmax.f32 %v361_v14, 0.0 }
 0x281   :  { %v522_v9 = vpop.f32.mrf.mxu1 }
 0x282   :  { %v371_v11 = vadd.f32 %v522_v9, %v276_v7  ;;  %v374_v20 = vmax.f32 %v356_v17, 0.0 }
 0x283   :  { %v365_v13 = vpop.f32.mrf.mxu1 }
 0x284   :  { %v377_v15 = vmax.f32 %v371_v11, 0.0  ;;  %v366_v16 = vadd.f32 %v365_v13, %v275_v10 }
 0x286   :  { %v376_v18 = vmax.f32 %v366_v16, 0.0  ;;  %524 = vmatpush3.msra.mxu1 %v377_v15 }
 0x287   :  { %525 = vmatprep.subr.mxu1 %v567_v2 }
 0x288   :  { %526 = vmatpush3.msra.mxu1 %v376_v18 }
 0x289   :  { %527 = vmatprep.subr.mxu1 %v567_v2 }
 0x28a   :  { %528 = vmatpush3.msra.mxu1 %v375_v19 }
 0x28b   :  { %529 = vmatprep.subr.mxu1 %v567_v2 }
 0x28c   :  { %530 = vmatpush3.msra.mxu1 %v374_v20 }
 0x28d   :  { %532 = vmatmul.mubr.msk.f32.vlgmr.msra.gmra.mxu1 %vm385_vm11, %v378_v21 }
 0x34d   :  { %v455_v23 = vpop.f32.mrf.mxu1 }
 0x34e   :  { %v456_v24 = vadd.f32 %v455_v23, %v383_v22 }
 0x34f   :  { %v533_v25 = vpop.f32.mrf.mxu1 }
 0x350   :  { %459 = vst.msk [vmem:[#allocation2] sm:$0xff] %vm160_vm8, %v456_v24 }
 0x351   :  { %553 = shalt.err (!%p550_p4)
}
 0x352   :  { %469 = dma.vmem_to_hbm [thread:$0]  %s467_s30, 128, %s699_s6, [#allocation3]  }
 0x353   :  { %562 = dma.done.wait [#allocation3], 128  }
 0x354   :  { %563 = vsyncadd [#allocation3], 4294967168 }
 0x355   :  { %473 = vsyncpa [#allocation3], 1 }

</bundles_post_ra>
